<compile_context>
chip_gen: v5e
topology: v5e:2x2
jax: 0.10.0
libtpu: 0.0.40
codegen_flags: <defaults>
</compile_context>

<pallas_src>
import math
import functools

import jax
import jax.numpy as jnp
from jax import lax
from jax.experimental import pallas as pl
from jax.experimental.pallas import tpu as pltpu

# ----- small synthetic config consistent with the module -----
BATCH = 2
IN_CHANNELS = 32                 # embed_dim (divisible by NUM_HEADS)
FEATURE_SHAPE = (8, 8)           # spatial feature map (H, W)
NUM_HEADS = 4
HEAD_DIM = IN_CHANNELS // NUM_HEADS
NUM_TOKENS = FEATURE_SHAPE[0] * FEATURE_SHAPE[1]
OUT_DIM = IN_CHANNELS * 2        # attention pool output dim
NUM_CLASSES = 8
DROPOUT_PROBA = 0.2              # inference mode -> dropout is identity


def classification_head_kernel(x_ref, poss_ref, posm_ref, wkv_ref, bkv_ref,
                               wq_ref, bq_ref, wout_ref, bout_ref, o_ref):
    """Batched forward for all rows; everything resident in VMEM.

    x_ref:    (N, T, C)   spatial tokens (channels on lanes)
    poss_ref: (T, C)      positional embedding for the spatial tokens
    posm_ref: (1, C)      positional embedding for the mean token
    wkv_ref:  (C, 2C)     fused [Wk | Wv] (transposed),  bkv_ref: (1, 2C)
    wq_ref:   (C, C)      Wq (transposed),               bq_ref:  (1, C)
    wout_ref: (C, NC)     fused c_proj @ fc,             bout_ref:(1, NC)
    o_ref:    (N, NC)
    """
    N, T, C = x_ref.shape
    H = NUM_HEADS
    d = C // H
    scale = 1.0 / math.sqrt(d)

    x = x_ref[...]                                                   # (N, T, C)
    xs = x + poss_ref[...][None]                                     # spatial tokens + pos
    mean_row = jnp.mean(x, axis=1) + posm_ref[...]                   # (N, C) mean token + pos

    # ---- projections: KV for all tokens, Q only for the N mean-token rows ----
    kv_s = (jnp.dot(xs.reshape(N * T, C), wkv_ref[...],
                    preferred_element_type=jnp.float32)
            + bkv_ref[...]).reshape(N, T, 2 * C)                     # (N, T, 2C)
    k_s = kv_s[:, :, :C]                                             # (N, T, C)
    v_s = kv_s[:, :, C:]                                             # (N, T, C)
    kv_m = jnp.dot(mean_row, wkv_ref[...],
                   preferred_element_type=jnp.float32) + bkv_ref[...]  # (N, 2C)
    k_m, v_m = kv_m[:, :C], kv_m[:, C:]
    q = jnp.dot(mean_row, wq_ref[...],
                preferred_element_type=jnp.float32) + bq_ref[...]    # (N, C)

    # ---- per-head channel masks built from iota (no head loop, no transposes) ----
    ci = lax.broadcasted_iota(jnp.int32, (C, H), 0)
    hi = lax.broadcasted_iota(jnp.int32, (C, H), 1)
    mask_ch = ((ci >= hi * d) & (ci < (hi + 1) * d)).astype(jnp.float32)   # (C, H)
    hi2 = lax.broadcasted_iota(jnp.int32, (H, C), 0)
    ci2 = lax.broadcasted_iota(jnp.int32, (H, C), 1)
    mask_hc = ((ci2 >= hi2 * d) & (ci2 < (hi2 + 1) * d)).astype(jnp.float32)  # (H, C)

    # ---- scores: tokens on sublanes, heads on lanes; plain A@B (no k transpose) ----
    kq_s = k_s * q[:, None, :]                                       # (N, T, C) VPU
    s_s = jnp.einsum('ntc,ch->nth', kq_s, mask_ch,
                     preferred_element_type=jnp.float32) * scale     # (N, T, H)
    s_m = jnp.dot(k_m * q, mask_ch,
                  preferred_element_type=jnp.float32) * scale        # (N, H) mean-token score

    # ---- softmax over T spatial positions + the mean token (no padding / masking) ----
    m = jnp.maximum(jnp.max(s_s, axis=1), s_m)                       # (N, H)
    e_s = jnp.exp(s_s - m[:, None, :])                               # (N, T, H)
    e_m = jnp.exp(s_m - m)                                           # (N, H)
    denom = jnp.sum(e_s, axis=1) + e_m                               # (N, H)
    inv = pl.reciprocal(denom, approx=True)                          # EUP slot (free-ish)
    p_s = e_s * inv[:, None, :]
    p_m = e_m * inv

    # ---- weighted values: expand per-head probs to channels, then token reduction ----
    pc_s = jnp.einsum('nth,hc->ntc', p_s, mask_hc,
                      preferred_element_type=jnp.float32)            # (N, T, C)
    attn = (jnp.sum(pc_s * v_s, axis=1)
            + jnp.dot(p_m, mask_hc, preferred_element_type=jnp.float32) * v_m)  # (N, C)

    # ---- fused (c_proj -> dropout(identity) -> fc) + class softmax ----
    z = jnp.dot(attn, wout_ref[...],
                preferred_element_type=jnp.float32) + bout_ref[...]  # (N, NC)
    zm = jnp.max(z, axis=-1, keepdims=True)
    ez = jnp.exp(z - zm)
    # exact division here to keep close parity with the reference output
    o_ref[...] = (ez / jnp.sum(ez, axis=-1, keepdims=True)).astype(o_ref.dtype)


def init_params(key):
    """Deterministic parameter init mirroring the PyTorch module shapes.

    Linear weights are stored transposed (in, out) so the kernel right-multiplies.
    """
    C, T, O, NC = IN_CHANNELS, NUM_TOKENS, OUT_DIM, NUM_CLASSES
    keys = jax.random.split(key, 11)

    def linear(kw, kb, fan_in, fan_out):
        bound = 1.0 / math.sqrt(fan_in)
        w_t = jax.random.uniform(kw, (fan_in, fan_out), jnp.float32, -bound, bound)
        b = jax.random.uniform(kb, (1, fan_out), jnp.float32, -bound, bound)
        return w_t, b

    pos = jax.random.normal(keys[0], (T + 1, C), jnp.float32) / math.sqrt(C)
    wq_t, bq = linear(keys[1], keys[2], C, C)
    wk_t, bk = linear(keys[3], keys[4], C, C)
    wv_t, bv = linear(keys[5], keys[6], C, C)
    wc_t, bc = linear(keys[7], keys[8], C, O)
    wfc_t, bfc = linear(keys[9], keys[10], O, NC)
    return dict(pos=pos, wq_t=wq_t, bq=bq, wk_t=wk_t, bk=bk, wv_t=wv_t, bv=bv,
                wc_t=wc_t, bc=bc, wfc_t=wfc_t, bfc=bfc)


def prepare_params(params):
    """One-time weight fusion, hoisted OUT of the per-call jitted path.

    Returns the exact operands the kernel consumes:
      * pos split into spatial rows and the mean-token row,
      * [Wk | Wv] fused into one (C, 2C) matrix (Q kept separate -> applied to
        only the N mean-token rows in the kernel),
      * c_proj and fc fused into a single (C, NC) matmul (dropout = identity at
        inference).
    # TODO(synk): a training-mode variant needs an RNG dropout mask and must not
    # fuse c_proj with fc.
    """
    pos = params["pos"]
    fused = dict(
        pos_spatial=pos[1:],                                                # (T, C)
        pos_mean=pos[:1],                                                   # (1, C)
        w_kv=jnp.concatenate([params["wk_t"], params["wv_t"]], axis=1),     # (C, 2C)
        b_kv=jnp.concatenate([params["bk"], params["bv"]], axis=1),         # (1, 2C)
        w_q=params["wq_t"],                                                 # (C, C)
        b_q=params["bq"],                                                   # (1, C)
        w_out=params["wc_t"] @ params["wfc_t"],                             # (C, NC)
        b_out=params["bc"] @ params["wfc_t"] + params["bfc"],               # (1, NC)
    )
    # Materialize now so no fusion work runs per call.
    return jax.tree_util.tree_map(
        lambda a: jax.device_put(jnp.asarray(a, jnp.float32)), fused)


@jax.jit
def classification_head(x_nchw, fused):
    N, C, Hh, Ww = x_nchw.shape
    T = Hh * Ww

    # NCHW -> (N, T, C) token layout (same token ordering as flatten(2).permute(2,0,1)).
    # TODO(synk): the (C,T)->(T,C) transpose is left in the wrapper; negligible at this size.
    x_tok = jnp.transpose(x_nchw.reshape(N, C, T), (0, 2, 1)).astype(jnp.float32)

    args = (x_tok, fused["pos_spatial"], fused["pos_mean"],
            fused["w_kv"], fused["b_kv"], fused["w_q"], fused["b_q"],
            fused["w_out"], fused["b_out"])

    # Advisory cost estimate so XLA schedules the custom call well next to a backbone.
    flops = (2 * N * T * C * (2 * C)          # KV projection over spatial tokens
             + 2 * N * C * (3 * C)            # KV + Q for the mean rows
             + 2 * N * T * C * NUM_HEADS * 2  # score + prob-expansion matmuls
             + 2 * N * T * C                  # weighted-value token reduction
             + 2 * N * C * NUM_CLASSES)       # fused c_proj@fc
    transcendentals = N * (T + 2) * NUM_HEADS + N * NUM_CLASSES
    bytes_accessed = 4 * (sum(a.size for a in args) + N * NUM_CLASSES)

    vspec = functools.partial(pl.BlockSpec, memory_space=pltpu.MemorySpace.VMEM)
    return pl.pallas_call(
        classification_head_kernel,
        out_shape=jax.ShapeDtypeStruct((N, NUM_CLASSES), jnp.float32),
        in_specs=[vspec() for _ in args],
        out_specs=vspec(),
        cost_estimate=pl.CostEstimate(flops=flops,
                                      transcendentals=transcendentals,
                                      bytes_accessed=bytes_accessed),
    )(*args)


def reference(x_nchw, params):
    """Pure-JAX reference of the PyTorch forward for verification."""
    N, C, H, W = x_nchw.shape
    T = H * W
    d = C // NUM_HEADS
    tok = jnp.transpose(x_nchw.reshape(N, C, T), (0, 2, 1))
    mean = tok.mean(axis=1, keepdims=True)
    full = jnp.concatenate([mean, tok], axis=1) + params["pos"][None]     # (N, T+1, C)
    q = full[:, :1] @ params["wq_t"] + params["bq"]
    k = full @ params["wk_t"] + params["bk"]
    v = full @ params["wv_t"] + params["bv"]
    qh = q.reshape(N, 1, NUM_HEADS, d).transpose(0, 2, 1, 3)
    kh = k.reshape(N, T + 1, NUM_HEADS, d).transpose(0, 2, 1, 3)
    vh = v.reshape(N, T + 1, NUM_HEADS, d).transpose(0, 2, 1, 3)
    s = jnp.einsum("bhqd,bhkd->bhqk", qh, kh) / math.sqrt(d)
    p = jax.nn.softmax(s, axis=-1)
    o = jnp.einsum("bhqk,bhkd->bhqd", p, vh).transpose(0, 2, 1, 3).reshape(N, 1, C)[:, 0]
    y = o @ params["wc_t"] + params["bc"]
    z = y @ params["wfc_t"] + params["bfc"]
    return jax.nn.softmax(z, axis=-1)


if __name__ == "__main__":
    key = jax.random.PRNGKey(0)
    k_x, k_p = jax.random.split(key)
    x = jax.random.normal(
        k_x, (BATCH, IN_CHANNELS, FEATURE_SHAPE[0], FEATURE_SHAPE[1]), jnp.float32)
    params = init_params(k_p)
    fused = prepare_params(params)          # one-time weight fusion (not per-call)

    out = classification_head(x, fused)
    out = jax.block_until_ready(out)

    ref = reference(x, params)
    assert out.shape == (BATCH, NUM_CLASSES)
    # Tolerance loosened slightly vs exact f32: pl.reciprocal(approx=True) in the
    # attention softmax introduces up to ~1e-3 relative deviation (per review).
    assert jnp.allclose(out, ref, rtol=5e-3, atol=1e-5), "mismatch vs JAX reference"
    print("KERNEL_OK")
</pallas_src>

<mosaic_0001>
module attributes {stable_mosaic.version = 11 : i64} {
  func.func @classification_head_kernel(%arg0: memref<2x64x32xf32, #tpu.memory_space<vmem>>, %arg1: memref<64x32xf32, #tpu.memory_space<vmem>>, %arg2: memref<1x32xf32, #tpu.memory_space<vmem>>, %arg3: memref<32x64xf32, #tpu.memory_space<vmem>>, %arg4: memref<1x64xf32, #tpu.memory_space<vmem>>, %arg5: memref<32x32xf32, #tpu.memory_space<vmem>>, %arg6: memref<1x32xf32, #tpu.memory_space<vmem>>, %arg7: memref<32x8xf32, #tpu.memory_space<vmem>>, %arg8: memref<1x8xf32, #tpu.memory_space<vmem>>, %arg9: memref<2x8xf32, #tpu.memory_space<vmem>>) attributes {dimension_semantics = [], scalar_prefetch = 0 : i64, scratch_operands = 0 : i64, tpu.core_type = #tpu.core_type<tc>} {
    %c0 = arith.constant 0 : index
    %c0_0 = arith.constant 0 : index
    %c0_1 = arith.constant 0 : index
    %0 = vector.load %arg0[%c0, %c0_0, %c0_1] : memref<2x64x32xf32, #tpu.memory_space<vmem>>, vector<2x64x32xf32>
    %c0_2 = arith.constant 0 : index
    %c0_3 = arith.constant 0 : index
    %1 = vector.load %arg1[%c0_2, %c0_3] : memref<64x32xf32, #tpu.memory_space<vmem>>, vector<64x32xf32>
    %2 = vector.shape_cast %1 : vector<64x32xf32> to vector<1x64x32xf32>
    %3 = vector.broadcast %2 : vector<1x64x32xf32> to vector<2x64x32xf32>
    %4 = arith.addf %0, %3 : vector<2x64x32xf32>
    %cst = arith.constant dense<0.000000e+00> : vector<2x32xf32>
    %5 = vector.multi_reduction <add>, %0, %cst [1] : vector<2x64x32xf32> to vector<2x32xf32>
    %cst_4 = arith.constant 6.400000e+01 : f32
    %6 = vector.broadcast %cst_4 : f32 to vector<2x32xf32>
    %7 = arith.divf %5, %6 : vector<2x32xf32>
    %c0_5 = arith.constant 0 : index
    %c0_6 = arith.constant 0 : index
    %8 = vector.load %arg2[%c0_5, %c0_6] : memref<1x32xf32, #tpu.memory_space<vmem>>, vector<1x32xf32>
    %9 = vector.broadcast %8 : vector<1x32xf32> to vector<2x32xf32>
    %10 = arith.addf %7, %9 : vector<2x32xf32>
    %11 = vector.shape_cast %4 : vector<2x64x32xf32> to vector<128x32xf32>
    %c0_7 = arith.constant 0 : index
    %c0_8 = arith.constant 0 : index
    %12 = vector.load %arg3[%c0_7, %c0_8] : memref<32x64xf32, #tpu.memory_space<vmem>>, vector<32x64xf32>
    %cst_9 = arith.constant dense<0.000000e+00> : vector<128x64xf32>
    %13 = tpu.matmul %11, %12, %cst_9 {dimension_numbers = #tpu.dot_dimension_numbers<[1], [0], [0], [1], [0, 0, 1, 1], [], []>} : vector<128x32xf32>, vector<32x64xf32>, vector<128x64xf32> -> vector<128x64xf32>
    %c0_10 = arith.constant 0 : index
    %c0_11 = arith.constant 0 : index
    %14 = vector.load %arg4[%c0_10, %c0_11] : memref<1x64xf32, #tpu.memory_space<vmem>>, vector<1x64xf32>
    %15 = vector.broadcast %14 : vector<1x64xf32> to vector<128x64xf32>
    %16 = arith.addf %13, %15 : vector<128x64xf32>
    %17 = vector.shape_cast %16 : vector<128x64xf32> to vector<2x64x64xf32>
    %18 = vector.extract_strided_slice %17 {offsets = [0, 0, 0], sizes = [2, 64, 32], strides = [1, 1, 1]} : vector<2x64x64xf32> to vector<2x64x32xf32>
    %19 = vector.extract_strided_slice %17 {offsets = [0, 0, 32], sizes = [2, 64, 32], strides = [1, 1, 1]} : vector<2x64x64xf32> to vector<2x64x32xf32>
    %c0_12 = arith.constant 0 : index
    %c0_13 = arith.constant 0 : index
    %20 = vector.load %arg3[%c0_12, %c0_13] : memref<32x64xf32, #tpu.memory_space<vmem>>, vector<32x64xf32>
    %cst_14 = arith.constant dense<0.000000e+00> : vector<2x64xf32>
    %21 = tpu.matmul %10, %20, %cst_14 {dimension_numbers = #tpu.dot_dimension_numbers<[1], [0], [0], [1], [0, 0, 1, 1], [], []>} : vector<2x32xf32>, vector<32x64xf32>, vector<2x64xf32> -> vector<2x64xf32>
    %c0_15 = arith.constant 0 : index
    %c0_16 = arith.constant 0 : index
    %22 = vector.load %arg4[%c0_15, %c0_16] : memref<1x64xf32, #tpu.memory_space<vmem>>, vector<1x64xf32>
    %23 = vector.broadcast %22 : vector<1x64xf32> to vector<2x64xf32>
    %24 = arith.addf %21, %23 : vector<2x64xf32>
    %25 = vector.extract_strided_slice %24 {offsets = [0, 0], sizes = [2, 32], strides = [1, 1]} : vector<2x64xf32> to vector<2x32xf32>
    %26 = vector.extract_strided_slice %24 {offsets = [0, 32], sizes = [2, 32], strides = [1, 1]} : vector<2x64xf32> to vector<2x32xf32>
    %c0_17 = arith.constant 0 : index
    %c0_18 = arith.constant 0 : index
    %27 = vector.load %arg5[%c0_17, %c0_18] : memref<32x32xf32, #tpu.memory_space<vmem>>, vector<32x32xf32>
    %cst_19 = arith.constant dense<0.000000e+00> : vector<2x32xf32>
    %28 = tpu.matmul %10, %27, %cst_19 {dimension_numbers = #tpu.dot_dimension_numbers<[1], [0], [0], [1], [0, 0, 1, 1], [], []>} : vector<2x32xf32>, vector<32x32xf32>, vector<2x32xf32> -> vector<2x32xf32>
    %c0_20 = arith.constant 0 : index
    %c0_21 = arith.constant 0 : index
    %29 = vector.load %arg6[%c0_20, %c0_21] : memref<1x32xf32, #tpu.memory_space<vmem>>, vector<1x32xf32>
    %30 = vector.broadcast %29 : vector<1x32xf32> to vector<2x32xf32>
    %31 = arith.addf %28, %30 : vector<2x32xf32>
    %32 = tpu.iota {dimensions = array<i32: 0>} : vector<32x4xi32>
    %33 = tpu.iota {dimensions = array<i32: 1>} : vector<32x4xi32>
    %c8_i32 = arith.constant 8 : i32
    %34 = vector.broadcast %c8_i32 : i32 to vector<32x4xi32>
    %35 = arith.muli %33, %34 : vector<32x4xi32>
    %36 = arith.cmpi sge, %32, %35 : vector<32x4xi32>
    %c1_i32 = arith.constant 1 : i32
    %37 = vector.broadcast %c1_i32 : i32 to vector<32x4xi32>
    %38 = arith.addi %33, %37 : vector<32x4xi32>
    %c8_i32_22 = arith.constant 8 : i32
    %39 = vector.broadcast %c8_i32_22 : i32 to vector<32x4xi32>
    %40 = arith.muli %38, %39 : vector<32x4xi32>
    %41 = arith.cmpi slt, %32, %40 : vector<32x4xi32>
    %42 = arith.andi %36, %41 : vector<32x4xi1>
    %43 = arith.extui %42 : vector<32x4xi1> to vector<32x4xi32>
    %44 = arith.sitofp %43 : vector<32x4xi32> to vector<32x4xf32>
    %45 = tpu.iota {dimensions = array<i32: 0>} : vector<4x32xi32>
    %46 = tpu.iota {dimensions = array<i32: 1>} : vector<4x32xi32>
    %c8_i32_23 = arith.constant 8 : i32
    %47 = vector.broadcast %c8_i32_23 : i32 to vector<4x32xi32>
    %48 = arith.muli %45, %47 : vector<4x32xi32>
    %49 = arith.cmpi sge, %46, %48 : vector<4x32xi32>
    %c1_i32_24 = arith.constant 1 : i32
    %50 = vector.broadcast %c1_i32_24 : i32 to vector<4x32xi32>
    %51 = arith.addi %45, %50 : vector<4x32xi32>
    %c8_i32_25 = arith.constant 8 : i32
    %52 = vector.broadcast %c8_i32_25 : i32 to vector<4x32xi32>
    %53 = arith.muli %51, %52 : vector<4x32xi32>
    %54 = arith.cmpi slt, %46, %53 : vector<4x32xi32>
    %55 = arith.andi %49, %54 : vector<4x32xi1>
    %56 = arith.extui %55 : vector<4x32xi1> to vector<4x32xi32>
    %57 = arith.sitofp %56 : vector<4x32xi32> to vector<4x32xf32>
    %58 = vector.shape_cast %31 : vector<2x32xf32> to vector<2x1x32xf32>
    %59 = vector.broadcast %58 : vector<2x1x32xf32> to vector<2x64x32xf32>
    %60 = arith.mulf %18, %59 : vector<2x64x32xf32>
    "tpu.trace_start"() <{level = 10 : i32, message = "ntc,ch->nth"}> : () -> ()
    %cst_26 = arith.constant dense<0.000000e+00> : vector<2x64x4xf32>
    %61 = tpu.matmul %60, %44, %cst_26 {dimension_numbers = #tpu.dot_dimension_numbers<[2], [0], [0, 1], [1], [0, 0, 0, 1, 1, 1], [], []>} : vector<2x64x32xf32>, vector<32x4xf32>, vector<2x64x4xf32> -> vector<2x64x4xf32>
    "tpu.trace_stop"() : () -> ()
    %cst_27 = arith.constant 0.353553385 : f32
    %62 = vector.broadcast %cst_27 : f32 to vector<2x64x4xf32>
    %63 = arith.mulf %61, %62 : vector<2x64x4xf32>
    %64 = arith.mulf %25, %31 : vector<2x32xf32>
    %cst_28 = arith.constant dense<0.000000e+00> : vector<2x4xf32>
    %65 = tpu.matmul %64, %44, %cst_28 {dimension_numbers = #tpu.dot_dimension_numbers<[1], [0], [0], [1], [0, 0, 1, 1], [], []>} : vector<2x32xf32>, vector<32x4xf32>, vector<2x4xf32> -> vector<2x4xf32>
    %cst_29 = arith.constant 0.353553385 : f32
    %66 = vector.broadcast %cst_29 : f32 to vector<2x4xf32>
    %67 = arith.mulf %65, %66 : vector<2x4xf32>
    %cst_30 = arith.constant dense<0xFF800000> : vector<2x4xf32>
    %68 = vector.multi_reduction <maximumf>, %63, %cst_30 [1] : vector<2x64x4xf32> to vector<2x4xf32>
    %69 = arith.maximumf %68, %67 : vector<2x4xf32>
    %70 = vector.shape_cast %69 : vector<2x4xf32> to vector<2x1x4xf32>
    %71 = vector.broadcast %70 : vector<2x1x4xf32> to vector<2x64x4xf32>
    %72 = arith.subf %63, %71 : vector<2x64x4xf32>
    %73 = math.exp %72 : vector<2x64x4xf32>
    %74 = arith.subf %67, %69 : vector<2x4xf32>
    %75 = math.exp %74 : vector<2x4xf32>
    %cst_31 = arith.constant dense<0.000000e+00> : vector<2x4xf32>
    %76 = vector.multi_reduction <add>, %73, %cst_31 [1] : vector<2x64x4xf32> to vector<2x4xf32>
    %77 = arith.addf %76, %75 : vector<2x4xf32>
    %78 = tpu.reciprocal %77 {approx = true} : vector<2x4xf32> -> vector<2x4xf32>
    %79 = vector.shape_cast %78 : vector<2x4xf32> to vector<2x1x4xf32>
    %80 = vector.broadcast %79 : vector<2x1x4xf32> to vector<2x64x4xf32>
    %81 = arith.mulf %73, %80 : vector<2x64x4xf32>
    %82 = arith.mulf %75, %78 : vector<2x4xf32>
    "tpu.trace_start"() <{level = 10 : i32, message = "nth,hc->ntc"}> : () -> ()
    %cst_32 = arith.constant dense<0.000000e+00> : vector<2x64x32xf32>
    %83 = tpu.matmul %81, %57, %cst_32 {dimension_numbers = #tpu.dot_dimension_numbers<[2], [0], [0, 1], [1], [0, 0, 0, 1, 1, 1], [], []>} : vector<2x64x4xf32>, vector<4x32xf32>, vector<2x64x32xf32> -> vector<2x64x32xf32>
    "tpu.trace_stop"() : () -> ()
    %84 = arith.mulf %83, %19 : vector<2x64x32xf32>
    %cst_33 = arith.constant dense<0.000000e+00> : vector<2x32xf32>
    %85 = vector.multi_reduction <add>, %84, %cst_33 [1] : vector<2x64x32xf32> to vector<2x32xf32>
    %cst_34 = arith.constant dense<0.000000e+00> : vector<2x32xf32>
    %86 = tpu.matmul %82, %57, %cst_34 {dimension_numbers = #tpu.dot_dimension_numbers<[1], [0], [0], [1], [0, 0, 1, 1], [], []>} : vector<2x4xf32>, vector<4x32xf32>, vector<2x32xf32> -> vector<2x32xf32>
    %87 = arith.mulf %86, %26 : vector<2x32xf32>
    %88 = arith.addf %85, %87 : vector<2x32xf32>
    %c0_35 = arith.constant 0 : index
    %c0_36 = arith.constant 0 : index
    %89 = vector.load %arg7[%c0_35, %c0_36] : memref<32x8xf32, #tpu.memory_space<vmem>>, vector<32x8xf32>
    %cst_37 = arith.constant dense<0.000000e+00> : vector<2x8xf32>
    %90 = tpu.matmul %88, %89, %cst_37 {dimension_numbers = #tpu.dot_dimension_numbers<[1], [0], [0], [1], [0, 0, 1, 1], [], []>} : vector<2x32xf32>, vector<32x8xf32>, vector<2x8xf32> -> vector<2x8xf32>
    %c0_38 = arith.constant 0 : index
    %c0_39 = arith.constant 0 : index
    %91 = vector.load %arg8[%c0_38, %c0_39] : memref<1x8xf32, #tpu.memory_space<vmem>>, vector<1x8xf32>
    %92 = vector.broadcast %91 : vector<1x8xf32> to vector<2x8xf32>
    %93 = arith.addf %90, %92 : vector<2x8xf32>
    %cst_40 = arith.constant dense<0xFF800000> : vector<2xf32>
    %94 = vector.multi_reduction <maximumf>, %93, %cst_40 [1] : vector<2x8xf32> to vector<2xf32>
    %95 = vector.shape_cast %94 : vector<2xf32> to vector<2x1xf32>
    %96 = vector.broadcast %95 : vector<2x1xf32> to vector<2x8xf32>
    %97 = arith.subf %93, %96 : vector<2x8xf32>
    %98 = math.exp %97 : vector<2x8xf32>
    %cst_41 = arith.constant dense<0.000000e+00> : vector<2xf32>
    %99 = vector.multi_reduction <add>, %98, %cst_41 [1] : vector<2x8xf32> to vector<2xf32>
    %100 = vector.shape_cast %99 : vector<2xf32> to vector<2x1xf32>
    %101 = vector.broadcast %100 : vector<2x1xf32> to vector<2x8xf32>
    %102 = arith.divf %98, %101 : vector<2x8xf32>
    %c0_42 = arith.constant 0 : index
    %c0_43 = arith.constant 0 : index
    %103 = vector.load %arg9[%c0_42, %c0_43] : memref<2x8xf32, #tpu.memory_space<vmem>>, vector<2x8xf32>
    tpu.vector_store %arg9[%c0_42, %c0_43], %102 {strides = array<i32>} : memref<2x8xf32, #tpu.memory_space<vmem>>, vector<2x8xf32>,
    return
  }
}

</mosaic_0001>

<bundles_post_ra>
// kernel: classification_head.1
= control target key start
LH: loop header
LB: loop body
LE: loop exit
PB: predicated region body
PF: predicated region fallthrough
CT: control target
= control target key end

     0   :  { %14 = vsyncpa [#allocation3], 0  ;;  %s1793_s0 = inlined_call_operand.vmem [shape: f32[2,64,32], index: 0, kind: input, shape index: {}]   ;;  %s1794_s1 = inlined_call_operand.vmem [shape: f32[64,32], index: 1, kind: input, shape index: {}]   ;;  %s1795_s2 = inlined_call_operand.vmem [shape: f32[1,32], index: 2, kind: input, shape index: {}]   ;;  %s1796_s3 = inlined_call_operand.hbm [shape: f32[32,64], index: 3, kind: input, shape index: {}]   ;;  %s1797_s4 = inlined_call_operand.vmem [shape: f32[1,64], index: 4, kind: input, shape index: {}]   ;;  %s1798_s5 = inlined_call_operand.hbm [shape: f32[32,32], index: 5, kind: input, shape index: {}]   ;;  %s1799_s6 = inlined_call_operand.vmem [shape: f32[1,32], index: 6, kind: input, shape index: {}]   ;;  %s1800_s7 = inlined_call_operand.vmem [shape: f32[32,8], index: 7, kind: input, shape index: {}]   ;;  %s1801_s8 = inlined_call_operand.vmem [shape: f32[1,8], index: 8, kind: input, shape index: {}]   ;;  %s1802_s9 = inlined_call_operand.hbm [shape: f32[2,8], index: 9, kind: output, shape index: {}]  }
   0x1   :  { %15 = vsyncpa [#allocation6], 0 }
   0x2   :  { %16 = vsyncpa [#allocation4], 0  ;;  %s27_s11 = sshll.u32 %s1796_s3, 4  ;;  %s1297_s12 = smov [#allocation2]   ;;  %s28_s11 = int_to_ptr.hbm [resolvable:$true] %s27_s11 }
   0x3   :  { %s29_s13 = sshll.u32 %s1297_s12, 4  ;;  %s42_s16 = sshll.u32 %s1798_s5, 4  ;;  %s30_s13 = int_to_ptr.vmem [resolvable:$true] %s29_s13  ;;  %s43_s16 = int_to_ptr.hbm [resolvable:$true] %s42_s16 }
   0x4   :  { %s1298_s17 = smov 128   ;;  %s1299_s18 = smov 8  }
   0x5   :  { %35 = dma.hbm_to_vmem [thread:$0]  %s28_s11, 512, %s30_s13, [#allocation3], %s1298_s17, %s1298_s17, %s1299_s18  }
   0x6   :  { %s1300_s19 = smov [#allocation5]  }
   0x7   :  { %s44_s20 = sshll.u32 %s1300_s19, 4  ;;  %s45_s20 = int_to_ptr.vmem [resolvable:$true] %s44_s20 }
   0x8   :  { %50 = dma.hbm_to_vmem [thread:$0]  %s43_s16, 512, %s45_s20, [#allocation6], %s1298_s17, %s1298_s17, %s1299_s18  }
   0x9   :  { %1291 = dma.done.wait [#allocation3], 512  }
   0xa   :  { %1292 = vsyncadd [#allocation3], 4294966784 }
   0xb   :  { %1293 = dma.done.wait [#allocation6], 512  }
   0xc   :  { %1294 = vsyncadd [#allocation6], 4294966784  ;;  %v166_v0 = vld [vmem:[#allocation2 + $0x18] sm:$0xff]  ;;  %v1362_v1 = vld [vmem:[#allocation2 + $0x10] sm:$0xff]  ;;  %vm105_vm0 = vcmask 261120   ;;  %v1301_v4 = vmov 64.0  }
   0xd   :  { %231 = vmatpush.msra.mxu0 %v166_v0  ;;  %v65_v2 = vld [vmem:[%s1793_s0] sm:$0xff]  ;;  %1153 = vmatpush.msra.mxu1 %v166_v0  ;;  %1175 = vrcp.f32 %v1301_v4  ;;  %v1372_v5 = vld [vmem:[#allocation2 + $0x8] sm:$0xff]  ;;  %v1381_v8 = vld [vmem:[%s1793_s0 + $0x10] sm:$0xff]  ;;  %vm287_vm2 = vcmask 1041409   ;;  %s1302_s22 = smov 96   ;;  %vm553_vm15 = vcmask 31744  }
   0xe   :  { %v1370_v3 = vld [vmem:[%s1794_s1] sm:$0xff]  ;;  %v106_v6 = vsel %vm105_vm0, %v65_v2, 0.0  ;;  %v66_v7 = vld [vmem:[%s1793_s0 + $0x8] sm:$0xff]  ;;  %v109_v10 = vsel %vm105_vm0, %v1381_v8, 0.0  ;;  %v1402_v16 = vld [vmem:[%s1793_s0 + $0x50] sm:$0xff]  ;;  %s1074_s14 = sshll.u32 %s1802_s9, 4  ;;  %s1075_s14 = int_to_ptr.hbm [resolvable:$true] %s1074_s14 }
   0xf   :  { %232 = vmatpush.msra.mxu0 %v1362_v1  ;;  %v107_v9 = vsel %vm105_vm0, %v66_v7, 0.0  ;;  %1154 = vmatpush.msra.mxu1 %v1362_v1  ;;  %v1391_v11 = vld [vmem:[%s1793_s0 + $0x40] sm:$0xff]  ;;  %v1396_v12 = vld [vmem:[%s1793_s0 + $0x48] sm:$0xff]  ;;  %v89_v14 = vadd.f32 %v1370_v3, %v65_v2  ;;  %v1407_v17 = vld [vmem:[%s1793_s0 + $0x58] sm:$0xff]  ;;  %v130_v24 = vsel %vm105_vm0, %v1402_v16, 0.0 }
  0x10   :  { %v163_v13 = vld [vmem:[#allocation2] sm:$0xff]  ;;  %v108_v15 = vadd.f32 %v107_v9, %v106_v6  ;;  %v127_v18 = vsel %vm105_vm0, %v1391_v11, 0.0  ;;  %v128_v19 = vsel %vm105_vm0, %v1396_v12, 0.0  ;;  %v79_v21 = vld [vmem:[%s1793_s0 + $0x70] sm:$0xff]  ;;  %v132_v27 = vsel %vm105_vm0, %v1407_v17, 0.0  ;;  %v314_v28 = vld [vmem:[#allocation5 + $0x18] sm:$0xff] }
  0x11   :  { %233 = vmatpush.msra.mxu0 %v1372_v5  ;;  %1155 = vmatpush.msra.mxu1 %v1372_v5  ;;  %v1418_v20 = vld [vmem:[%s1793_s0 + $0x60] sm:$0xff]  ;;  %v1426_v22 = vld [vmem:[%s1794_s1 + $0x30] sm:$0xff]  ;;  %v129_v23 = vadd.f32 %v128_v19, %v127_v18  ;;  %v1436_v29 = vld [vmem:[%s1793_s0 + $0x18] sm:$0xff]  ;;  %v138_v54 = vsel %vm105_vm0, %v79_v21, 0.0 }
  0x12   :  { %v110_v25 = vadd.f32 %v109_v10, %v108_v15  ;;  %v103_v26 = vadd.f32 %v1426_v22, %v79_v21  ;;  %v1443_v31 = vld [vmem:[%s1793_s0 + $0x68] sm:$0xff]  ;;  %v1448_v33 = vld [vmem:[%s1793_s0 + $0x20] sm:$0xff]  ;;  %v111_v35 = vsel %vm105_vm0, %v1436_v29, 0.0  ;;  %v134_v36 = vsel %vm105_vm0, %v1418_v20, 0.0  ;;  %v313_v37 = vld [vmem:[#allocation5 + $0x10] sm:$0xff]  ;;  %331 = vmatpush.msra.mxu2 %v314_v28 }
  0x13   :  { %v1438_v30 = vpop.eup %1175  ;;  %234 = vmatpush.msra.mxu0 %v163_v13  ;;  %1156 = vmatpush.msra.mxu1 %v163_v13  ;;  %v131_v32 = vadd.f32 %v130_v24, %v129_v23  ;;  %v1453_v34 = vld [vmem:[%s1793_s0 + $0x28] sm:$0xff]  ;;  %v1464_v38 = vld [vmem:[%s1793_s0 + $0x30] sm:$0xff]  ;;  %v113_v40 = vsel %vm105_vm0, %v1448_v33, 0.0  ;;  %v1478_v44 = vld [vmem:[%s1794_s1 + $0x38] sm:$0xff]  ;;  %v136_v45 = vsel %vm105_vm0, %v1443_v31, 0.0 }
  0x14   :  { %1085 = vmatmul.msk.f32.vlgmr.msra.gmra.mxu0 %vm105_vm0, %v89_v14  ;;  %1099 = vmatmul.msk.f32.vlgmr.msra.gmra.mxu1 %vm105_vm0, %v103_v26  ;;  %v112_v39 = vadd.f32 %v111_v35, %v110_v25  ;;  %v1471_v41 = vld [vmem:[%s1794_s1 + $0x8] sm:$0xff]  ;;  %v115_v43 = vsel %vm105_vm0, %v1453_v34, 0.0  ;;  %v1485_v46 = vld [vmem:[%s1793_s0 + $0x38] sm:$0xff]  ;;  %v149_v49 = vmul.f32 64.0, %v1438_v30  ;;  %v117_v51 = vsel %vm105_vm0, %v1464_v38, 0.0  ;;  %v311_v57 = vld [vmem:[#allocation5] sm:$0xff] }
  0x15   :  { %v133_v42 = vadd.f32 %v132_v27, %v131_v32  ;;  %303 = vmatpush.msrb.mxu1 %v166_v0  ;;  %v312_v48 = vld [vmem:[#allocation5 + $0x8] sm:$0xff]  ;;  %332 = vmatpush.msra.mxu2 %v313_v37  ;;  %v80_v52 = vld [vmem:[%s1793_s0 + $0x78] sm:$0xff]  ;;  %v90_v53 = vadd.f32 %v1471_v41, %v66_v7  ;;  %v119_v59 = vsel %vm105_vm0, %v1485_v46, 0.0  ;;  %vm153_vm1 = vweird.f32 %v1438_v30  ;;  %v1171_v28 = vld [vmem:[%s1795_s2] ss:$0 sm:$0xff] }
  0x16   :  { %v114_v47 = vadd.f32 %v113_v40, %v112_v39  ;;  %v104_v56 = vadd.f32 %v1478_v44, %v80_v52  ;;  %v140_v61 = vsel %vm105_vm0, %v80_v52, 0.0  ;;  %v150_v0 = vsub.f32 1.0, %v149_v49  ;;  %v84_v19 = vld [vmem:[%s1794_s1 + $0x18] sm:$0xff] }
  0x17   :  { %v135_v50 = vadd.f32 %v134_v36, %v133_v42  ;;  %304 = vmatpush.msrb.mxu1 %v1362_v1  ;;  %333 = vmatpush.msra.mxu2 %v312_v48  ;;  %v83_v1 = vld [vmem:[%s1794_s1 + $0x10] sm:$0xff]  ;;  %v92_v24 = vadd.f32 %v84_v19, %v1436_v29  ;;  %v97_v36 = vadd.f32 %v1370_v3, %v1391_v11  ;;  %v85_v29 = vld [vmem:[%s1794_s1 + $0x20] sm:$0xff]  ;;  %v86_v11 = vld [vmem:[%s1794_s1 + $0x28] sm:$0xff]  ;;  %v1303_v52 = vmov 1.0  }
  0x18   :  { %v116_v55 = vadd.f32 %v115_v43, %v114_v47  ;;  %v151_v9 = vmul.f32 %v1438_v30, %v150_v0  ;;  %v93_v40 = vadd.f32 %v85_v29, %v1448_v33  ;;  %v98_v3 = vadd.f32 %v1471_v41, %v1396_v12  ;;  %v1173_v0 = vld [vmem:[%s1799_s6] ss:$0 sm:$0xff] }
  0x19   :  { %v137_v58 = vadd.f32 %v136_v45, %v135_v50  ;;  %305 = vmatpush.msrb.mxu1 %v1372_v5  ;;  %334 = vmatpush.msra.mxu2 %v311_v57  ;;  %v91_v5 = vadd.f32 %v83_v1, %v1381_v8  ;;  %v94_v43 = vadd.f32 %v86_v11, %v1453_v34 }
  0x1a   :  { %v118_v60 = vadd.f32 %v117_v51, %v116_v55  ;;  %v152_v18 = vadd.f32 %v1438_v30, %v151_v9  ;;  %v99_v33 = vadd.f32 %v83_v1, %v1402_v16  ;;  %v95_v45 = vadd.f32 %v1426_v22, %v1464_v38 }
  0x1b   :  { %v139_v62 = vadd.f32 %v138_v54, %v137_v58  ;;  %306 = vmatpush.msrb.mxu1 %v163_v13  ;;  %v100_v47 = vadd.f32 %v84_v19, %v1407_v17  ;;  %v96_v12 = vadd.f32 %v1478_v44, %v1485_v46  ;;  %v101_v41 = vadd.f32 %v85_v29, %v1418_v20  ;;  %v1558_v20 = vld [vmem:[%s1797_s4] ss:$0 sm:$0xff] }
  0x1c   :  { %1086 = vmatmul.msk.f32.gmra.mxu0 %vm105_vm0, %v90_v53  ;;  %v120_v63 = vadd.f32 %v119_v59, %v118_v60  ;;  %1100 = vmatmul.msk.f32.gmra.mxu1 %vm105_vm0, %v104_v56  ;;  %v154_v26 = vsel %vm153_vm1, %v1438_v30, %v152_v18  ;;  %v102_v16 = vadd.f32 %v86_v11, %v1443_v31  ;;  %v339_v17 = vlaneseq }
  0x1d   :  { %v141_v2 = vadd.f32 %v140_v61, %v139_v62 }
  0x1e   :  { %v121_v4 = vrot.slane %v120_v63, 4  ;;  %v1553_v22 = vand.u32 127, %v339_v17  ;;  %v1560_v34 = vshrl.u32 %v339_v17, 7 }
  0x1f   :  { %v142_v6 = vrot.slane %v141_v2, 4 }
  0x20   :  { %v122_v7 = vadd.f32 %v121_v4, %v120_v63  ;;  %v351_v38 = vadd.s32 1, %v1553_v22  ;;  %v343_v46 = vadd.s32 24, %v1560_v34  ;;  %v346_v48 = vmul.u32 8, %v1553_v22 }
  0x21   :  { %v143_v10 = vadd.f32 %v142_v6, %v141_v2  ;;  %v342_v50 = vadd.s32 16, %v1560_v34  ;;  %v341_v53 = vadd.s32 8, %v1560_v34 }
  0x22   :  { %v123_v13 = vrot.slane %v122_v7, 2  ;;  %v352_v31 = vmul.u32 8, %v351_v38  ;;  %vm350_vm3 = vcmp.ge.s32.totalorder %v343_v46, %v346_v48  ;;  %vm347_vm12 = vcmp.ge.s32.totalorder %v1560_v34, %v346_v48 }
  0x23   :  { %v144_v14 = vrot.slane %v143_v10, 2  ;;  %vm349_vm6 = vcmp.ge.s32.totalorder %v342_v50, %v346_v48  ;;  %vm348_vm9 = vcmp.ge.s32.totalorder %v341_v53, %v346_v48 }
  0x24   :  { %1087 = vmatmul.msk.f32.gmra.mxu0 %vm105_vm0, %v91_v5  ;;  %v124_v15 = vadd.f32 %v123_v13, %v122_v7  ;;  %vm356_vm4 = vcmp.lt.s32.totalorder %v343_v46, %v352_v31  ;;  %vm355_vm7 = vcmp.lt.s32.totalorder %v342_v50, %v352_v31  ;;  %vm354_vm10 = vcmp.lt.s32.totalorder %v341_v53, %v352_v31 }
  0x25   :  { %v145_v21 = vadd.f32 %v144_v14, %v143_v10  ;;  %vm1568_vm5 = vmand %vm350_vm3, %vm356_vm4  ;;  %vm353_vm13 = vcmp.lt.s32.totalorder %v1560_v34, %v352_v31 }
  0x26   :  { %v125_v23 = vrot.slane %v124_v15, 1  ;;  %1108 = vmatpush.msk.msra.mxu1 %vm1568_vm5, %v1303_v52  ;;  %1157 = vmatpush.msk.msra.mxu3 %vm1568_vm5, %v1303_v52  ;;  %vm1577_vm8 = vmand %vm349_vm6, %vm355_vm7  ;;  %vm1041_vm6 = vcmask 58368  }
  0x27   :  { %v146_v8 = vrot.slane %v145_v21, 1  ;;  %vm358_vm11 = vmand %vm348_vm9, %vm354_vm10 }
  0x28   :  { %v126_v25 = vadd.f32 %v125_v23, %v124_v15  ;;  %1109 = vmatpush.msk.msra.mxu1 %vm1577_vm8, %v1303_v52  ;;  %1158 = vmatpush.msk.msra.mxu3 %vm1577_vm8, %v1303_v52  ;;  %vm357_vm14 = vmand %vm347_vm12, %vm353_vm13 }
  0x29   :  { %v147_v27 = vadd.f32 %v146_v8, %v145_v21 }
  0x2a   :  { %v155_v32 = vmul.f32 %v154_v26, %v126_v25  ;;  %1110 = vmatpush.msk.msra.mxu1 %vm358_vm11, %v1303_v52  ;;  %1159 = vmatpush.msk.msra.mxu3 %vm358_vm11, %v1303_v52 }
  0x2b   :  { %v156_v35 = vmul.f32 %v154_v26, %v147_v27 }
  0x2c   :  { %1088 = vmatmul.msk.f32.gmra.mxu0 %vm105_vm0, %v92_v24  ;;  %v161_v37 = vadd.f32 %v1171_v28, %v155_v32  ;;  %1111 = vmatpush.msk.msra.mxu1 %vm357_vm14, %v1303_v52 }
  0x2d   :  { %v162_v39 = vadd.f32 %v1171_v28, %v156_v35  ;;  %1160 = vmatpush.msk.msra.mxu3 %vm357_vm14, %v1303_v52 }
  0x2f   :  { %v286_v30 = vrot.slane %v162_v39, 7 }
  0x31   :  { %v288_v42 = vsel %vm287_vm2, %v286_v30, %v161_v37 }
  0x32   :  { %1102 = vmatmul.msk.f32.vlgmr.msra.gmra.mxu2 %vm105_vm0, %v288_v42  ;;  %1101 = vmatmul.msk.f32.vlgmr.msrb.gmra.mxu1 %vm105_vm0, %v288_v42 }
  0x33   :  { %1128 = vmatpush.msk.msrb.mxu1 %vm1568_vm5, %v1303_v52  ;;  %vm782_vm5 = vcmask 1043456  }
  0x34   :  { %1089 = vmatmul.msk.f32.gmra.mxu0 %vm105_vm0, %v93_v40 }
  0x35   :  { %1129 = vmatpush.msk.msrb.mxu1 %vm1577_vm8, %v1303_v52 }
  0x37   :  { %1130 = vmatpush.msk.msrb.mxu1 %vm358_vm11, %v1303_v52 }
  0x39   :  { %1131 = vmatpush.msk.msrb.mxu1 %vm357_vm14, %v1303_v52 }
  0x3c   :  { %1090 = vmatmul.msk.f32.gmra.mxu0 %vm105_vm0, %v94_v43 }
  0x44   :  { %1091 = vmatmul.msk.f32.gmra.mxu0 %vm105_vm0, %v95_v45 }
  0x4c   :  { %1092 = vmatmul.msk.f32.gmra.mxu0 %vm105_vm0, %v96_v12 }
  0x54   :  { %1093 = vmatmul.msk.f32.gmra.mxu0 %vm105_vm0, %v97_v36 }
  0x5c   :  { %1094 = vmatmul.msk.f32.gmra.mxu0 %vm105_vm0, %v98_v3 }
  0x64   :  { %1095 = vmatmul.msk.f32.gmra.mxu0 %vm105_vm0, %v99_v33 }
  0x6c   :  { %1096 = vmatmul.msk.f32.gmra.mxu0 %vm105_vm0, %v100_v47 }
  0x74   :  { %1097 = vmatmul.msk.f32.gmra.mxu0 %vm105_vm0, %v101_v41 }
  0x7c   :  { %1098 = vmatmul.msk.f32.gmra.mxu0 %vm105_vm0, %v102_v16 }
  0x91   :  { %v236_v44 = vpop.f32.mrf.mxu0  ;;  %v278_v61 = vpop.f32.mrf.mxu1 }
  0x92   :  { %v237_v49 = vadd.f32 %v1558_v20, %v236_v44  ;;  %v279_v33 = vadd.f32 %v1558_v20, %v278_v61 }
  0x94   :  { %867 = vrot.lane.b32.xlu1 %v237_v49, %s1302_s22 }
  0x99   :  { %v239_v55 = vpop.f32.mrf.mxu0  ;;  %v281_v6 = vpop.f32.mrf.mxu1 }
  0x9a   :  { %v240_v56 = vadd.f32 %v1558_v20, %v239_v55  ;;  %v282_v17 = vadd.f32 %v1558_v20, %v281_v6 }
  0x9c   :  { %869 = vrot.lane.b32.xlu1 %v240_v56, %s1302_s22 }
  0xa1   :  { %v242_v57 = vpop.f32.mrf.mxu0 }
  0xa2   :  { %v243_v58 = vadd.f32 %v1558_v20, %v242_v57 }
  0xa4   :  { %871 = vrot.lane.b32.xlu2 %v243_v58, %s1302_s22 }
  0xa9   :  { %v245_v59 = vpop.f32.mrf.mxu0 }
  0xaa   :  { %v246_v60 = vadd.f32 %v1558_v20, %v245_v59 }
  0xac   :  { %873 = vrot.lane.b32.xlu1 %v246_v60, %s1302_s22 }
  0xaf   :  { %v308_v18 = vpop.f32.mrf.mxu1 }
  0xb0   :  { %v309_v19 = vadd.f32 %v1558_v20, %v308_v18 }
  0xb1   :  { %v248_v62 = vpop.f32.mrf.mxu0 }
  0xb2   :  { %v249_v63 = vadd.f32 %v1558_v20, %v248_v62 }
  0xb4   :  { %875 = vrot.lane.b32.xlu0 %v249_v63, %s1302_s22 }
  0xb5   :  { %v336_v1 = vpop.f32.mrf.mxu2 }
  0xb6   :  { %v337_v2 = vadd.f32 %v1173_v0, %v336_v1 }
  0xb8   :  { %v379_v4 = vperm.slane %v337_v2, 0  ;;  %v528_v23 = vmul.f32 %v337_v2, %v309_v19  ;;  %v378_v30 = vrot.slane %v337_v2, 1 }
  0xb9   :  { %v251_v5 = vpop.f32.mrf.mxu0 }
  0xba   :  { %v383_v7 = vmul.f32 %v379_v4, %v237_v49  ;;  %v385_v9 = vmul.f32 %v379_v4, %v243_v58  ;;  %v252_v10 = vadd.f32 %v1558_v20, %v251_v5  ;;  %v384_v14 = vmul.f32 %v379_v4, %v240_v56 }
  0xbb   :  { %v386_v15 = vmul.f32 %v379_v4, %v246_v60  ;;  %v387_v8 = vmul.f32 %v379_v4, %v249_v63  ;;  %v380_v40 = vperm.slane %v378_v30, 0 }
  0xbc   :  { %1112 = vmatmul.msk.f32.vlgmr.msra.gmra.mxu1 %vm105_vm0, %v383_v7  ;;  %1114 = vmatmul.msk.f32.vlgmr.msra.gmra.mxu3 %vm105_vm0, %v385_v9  ;;  %v388_v25 = vmul.f32 %v379_v4, %v252_v10 }
  0xbd   :  { %877 = vrot.lane.b32.xlu2 %v252_v10, %s1302_s22  ;;  %v398_v48 = vmul.f32 %v380_v40, %v282_v17 }
  0xc1   :  { %v254_v13 = vpop.f32.mrf.mxu0 }
  0xc2   :  { %v255_v27 = vadd.f32 %v1558_v20, %v254_v13 }
  0xc4   :  { %1113 = vmatmul.msk.f32.gmra.mxu1 %vm105_vm0, %v384_v14  ;;  %1115 = vmatmul.msk.f32.gmra.mxu3 %vm105_vm0, %v386_v15  ;;  %v389_v32 = vmul.f32 %v379_v4, %v255_v27 }
  0xc9   :  { %v257_v21 = vpop.f32.mrf.mxu0 }
  0xca   :  { %v258_v36 = vadd.f32 %v1558_v20, %v257_v21 }
  0xcc   :  { %1116 = vmatmul.msk.f32.gmra.mxu3 %vm105_vm0, %v387_v8  ;;  %1132 = vmatmul.msk.f32.vlgmr.msrb.gmra.mxu1 %vm105_vm0, %v528_v23  ;;  %v390_v39 = vmul.f32 %v379_v4, %v258_v36 }
  0xd1   :  { %v260_v24 = vpop.f32.mrf.mxu0 }
  0xd2   :  { %v261_v26 = vadd.f32 %v1558_v20, %v260_v24 }
  0xd4   :  { %1117 = vmatmul.msk.f32.gmra.mxu3 %vm105_vm0, %v388_v25  ;;  %883 = vrot.lane.b32.xlu0 %v261_v26, %s1302_s22  ;;  %v391_v3 = vmul.f32 %v380_v40, %v261_v26 }
  0xd9   :  { %v263_v28 = vpop.f32.mrf.mxu0 }
  0xda   :  { %v264_v35 = vadd.f32 %v1558_v20, %v263_v28 }
  0xdc   :  { %1118 = vmatmul.msk.f32.gmra.mxu3 %vm105_vm0, %v389_v32  ;;  %885 = vrot.lane.b32.xlu0 %v264_v35, %s1302_s22  ;;  %v392_v45 = vmul.f32 %v380_v40, %v264_v35 }
  0xe1   :  { %v266_v37 = vpop.f32.mrf.mxu0 }
  0xe2   :  { %v267_v29 = vadd.f32 %v1558_v20, %v266_v37 }
  0xe4   :  { %1119 = vmatmul.msk.f32.gmra.mxu3 %vm105_vm0, %v390_v39  ;;  %887 = vrot.lane.b32.xlu2 %v267_v29, %s1302_s22  ;;  %v393_v41 = vmul.f32 %v380_v40, %v267_v29 }
  0xe9   :  { %v269_v42 = vpop.f32.mrf.mxu0 }
  0xea   :  { %v270_v11 = vadd.f32 %v1558_v20, %v269_v42 }
  0xec   :  { %1120 = vmatmul.msk.f32.gmra.mxu3 %vm105_vm0, %v391_v3  ;;  %889 = vrot.lane.b32.xlu0 %v270_v11, %s1302_s22  ;;  %v394_v38 = vmul.f32 %v380_v40, %v270_v11 }
  0xf1   :  { %v272_v43 = vpop.f32.mrf.mxu0 }
  0xf2   :  { %v273_v47 = vadd.f32 %v1558_v20, %v272_v43 }
  0xf4   :  { %1121 = vmatmul.msk.f32.gmra.mxu3 %vm105_vm0, %v392_v45  ;;  %895 = vrot.lane.b32.xlu0 %v279_v33, %s1302_s22  ;;  %v395_v44 = vmul.f32 %v380_v40, %v273_v47 }
  0xf5   :  { %891 = vrot.lane.b32.xlu2 %v273_v47, %s1302_s22 }
  0xf9   :  { %v275_v12 = vpop.f32.mrf.mxu0 }
  0xfa   :  { %v276_v16 = vadd.f32 %v1558_v20, %v275_v12  ;;  %v397_v20 = vmul.f32 %v380_v40, %v279_v33 }
  0xfc   :  { %1122 = vmatmul.msk.f32.gmra.mxu3 %vm105_vm0, %v393_v41  ;;  %881 = vrot.lane.b32.xlu0 %v258_v36, %s1302_s22  ;;  %v396_v46 = vmul.f32 %v380_v40, %v276_v16 }
  0xfd   :  { %893 = vrot.lane.b32.xlu1 %v276_v16, %s1302_s22  ;;  %897 = vrot.lane.b32.xlu2 %v282_v17, %s1302_s22 }
 0x104   :  { %1123 = vmatmul.msk.f32.gmra.mxu3 %vm105_vm0, %v394_v38 }
 0x105   :  { %879 = vrot.lane.b32.xlu1 %v255_v27, %s1302_s22 }
 0x10c   :  { %1124 = vmatmul.msk.f32.gmra.mxu3 %vm105_vm0, %v395_v44 }
 0x10d   :  { %997 = vrot.lane.b32.xlu1 %v309_v19, %s1302_s22 }
 0x114   :  { %1125 = vmatmul.msk.f32.gmra.mxu3 %vm105_vm0, %v396_v46 }
 0x11c   :  { %1126 = vmatmul.msk.f32.gmra.mxu3 %vm105_vm0, %v397_v20 }
 0x124   :  { %1127 = vmatmul.msk.f32.gmra.mxu3 %vm105_vm0, %v398_v48 }
 0x139   :  { %v464_v51 = vpop.f32.mrf.mxu1 }
 0x13a   :  { %v512_v57 = vmul.f32 0.35355338, %v464_v51 }
 0x13c   :  { %v554_v0 = vsel %vm553_vm15, %v512_v57, -inf }
 0x13f   :  { %v470_v31 = vpop.f32.mrf.mxu3 }
 0x140   :  { %v514_v55 = vmul.f32 0.35355338, %v470_v31 }
 0x141   :  { %v467_v53 = vpop.f32.mrf.mxu1 }
 0x142   :  { %v513_v58 = vmul.f32 0.35355338, %v467_v53  ;;  %v556_v61 = vsel %vm553_vm15, %v514_v55, -inf }
 0x143   :  { %v557_v6 = vmax.f32 %v554_v0, %v556_v61 }
 0x144   :  { %v555_v1 = vsel %vm553_vm15, %v513_v58, -inf }
 0x147   :  { %v473_v49 = vpop.f32.mrf.mxu3 }
 0x148   :  { %v515_v56 = vmul.f32 0.35355338, %v473_v49 }
 0x149   :  { %v549_v27 = vpop.f32.mrf.mxu1 }
 0x14a   :  { %v558_v62 = vsel %vm553_vm15, %v515_v56, -inf  ;;  %v1653_v35 = vmul.f32 0.35355338, %v549_v27 }
 0x14b   :  { %v559_v5 = vmax.f32 %v555_v1, %v558_v62 }
 0x14f   :  { %v476_v50 = vpop.f32.mrf.mxu3 }
 0x150   :  { %v516_v59 = vmul.f32 0.35355338, %v476_v50 }
 0x152   :  { %v560_v2 = vsel %vm553_vm15, %v516_v59, -inf }
 0x153   :  { %v561_v13 = vmax.f32 %v557_v6, %v560_v2 }
 0x157   :  { %v479_v52 = vpop.f32.mrf.mxu3 }
 0x158   :  { %v517_v60 = vmul.f32 0.35355338, %v479_v52 }
 0x15a   :  { %v562_v4 = vsel %vm553_vm15, %v517_v60, -inf }
 0x15b   :  { %v563_v14 = vmax.f32 %v559_v5, %v562_v4 }
 0x15f   :  { %v482_v54 = vpop.f32.mrf.mxu3 }
 0x160   :  { %v518_v63 = vmul.f32 0.35355338, %v482_v54 }
 0x162   :  { %v564_v9 = vsel %vm553_vm15, %v518_v63, -inf }
 0x163   :  { %v565_v18 = vmax.f32 %v561_v13, %v564_v9 }
 0x167   :  { %v485_v7 = vpop.f32.mrf.mxu3 }
 0x168   :  { %v519_v10 = vmul.f32 0.35355338, %v485_v7 }
 0x16a   :  { %v566_v15 = vsel %vm553_vm15, %v519_v10, -inf }
 0x16b   :  { %v567_v19 = vmax.f32 %v563_v14, %v566_v15 }
 0x16d   :  { %v568_v21 = vmax.f32 %v565_v18, %v567_v19 }
 0x16f   :  { %v569_v23 = vrot.slane %v568_v21, 4  ;;  %v1651_v8 = vpop.f32.mrf.mxu3 }
 0x170   :  { %v520_v15 = vmul.f32 0.35355338, %v1651_v8 }
 0x171   :  { %v570_v24 = vmax.f32 %v568_v21, %v569_v23 }
 0x173   :  { %v571_v25 = vrot.slane %v570_v24, 2 }
 0x175   :  { %v572_v26 = vmax.f32 %v570_v24, %v571_v25 }
 0x177   :  { %v573_v28 = vrot.slane %v572_v26, 1  ;;  %v491_v32 = vpop.f32.mrf.mxu3 }
 0x178   :  { %v521_v18 = vmul.f32 0.35355338, %v491_v32 }
 0x179   :  { %v574_v36 = vmax.f32 %v572_v26, %v573_v28  ;;  %v575_v26 = vsel %vm553_vm15, %v520_v15, -inf }
 0x17a   :  { %v576_v27 = vsel %vm553_vm15, %v521_v18, -inf }
 0x17b   :  { %v1656_v37 = vmax.f32 %v574_v36, %v1653_v35 }
 0x17d   :  { %v602_v39 = vperm.slane %v1656_v37, 0 }
 0x17f   :  { %v604_v29 = vsub.f32 %v512_v57, %v602_v39  ;;  %v605_v30 = vsub.f32 %v513_v58, %v602_v39  ;;  %v606_v40 = vsub.f32 %v514_v55, %v602_v39  ;;  %v607_v42 = vsub.f32 %v515_v56, %v602_v39  ;;  %v494_v3 = vpop.f32.mrf.mxu3 }
 0x180   :  { %v608_v11 = vsub.f32 %v516_v59, %v602_v39  ;;  %v609_v47 = vsub.f32 %v517_v60, %v602_v39  ;;  %v610_v41 = vsub.f32 %v518_v63, %v602_v39  ;;  %v611_v17 = vsub.f32 %v519_v10, %v602_v39 }
 0x181   :  { %v620_v43 = vmul.f32 1.442695, %v604_v29  ;;  %v622_v33 = vmul.f32 1.442695, %v605_v30  ;;  %v624_v45 = vmul.f32 1.442695, %v606_v40 }
 0x182   :  { %v626_v12 = vmul.f32 1.442695, %v607_v42  ;;  %v628_v16 = vmul.f32 1.442695, %v608_v11  ;;  %v630_v38 = vmul.f32 1.442695, %v609_v47 }
 0x183   :  { %1177 = vpow2.f32 %v620_v43  ;;  %v632_v46 = vmul.f32 1.442695, %v610_v41  ;;  %v634_v31 = vmul.f32 1.442695, %v611_v17  ;;  %v522_v13 = vmul.f32 0.35355338, %v494_v3 }
 0x184   :  { %1179 = vpow2.f32 %v622_v33  ;;  %v371_v17 = vadd.s32 1, %v1560_v34 }
 0x185   :  { %1181 = vpow2.f32 %v624_v45  ;;  %v577_v23 = vsel %vm553_vm15, %v522_v13, -inf }
 0x186   :  { %1183 = vpow2.f32 %v626_v12  ;;  %v578_v8 = vmax.f32 %v575_v26, %v577_v23 }
 0x187   :  { %v497_v44 = vpop.f32.mrf.mxu3  ;;  %1185 = vpow2.f32 %v628_v16 }
 0x188   :  { %1187 = vpow2.f32 %v630_v38  ;;  %v523_v14 = vmul.f32 0.35355338, %v497_v44  ;;  %v597_v38 = vrot.slane %v1653_v35, 1 }
 0x189   :  { %v1659_v20 = vpop.eup %1177  ;;  %1189 = vpow2.f32 %v632_v46  ;;  %v369_v46 = vmul.u32 8, %v1560_v34 }
 0x18a   :  { %v1661_v48 = vpop.eup %1179  ;;  %v660_v49 = vsel %vm553_vm15, %v1659_v20, 0.0  ;;  %1191 = vpow2.f32 %v634_v31  ;;  %v579_v24 = vsel %vm553_vm15, %v523_v14, -inf  ;;  %v372_v31 = vmul.u32 8, %v371_v17 }
 0x18b   :  { %v1665_v50 = vpop.eup %1181  ;;  %v661_v51 = vsel %vm553_vm15, %v1661_v48, 0.0  ;;  %v580_v32 = vmax.f32 %v576_v27, %v579_v24  ;;  %vm370_vm1 = vcmp.ge.s32.totalorder %v1553_v22, %v369_v46 }
 0x18c   :  { %v1669_v52 = vpop.eup %1183  ;;  %v662_v53 = vadd.f32 %v661_v51, %v660_v49  ;;  %v663_v54 = vsel %vm553_vm15, %v1665_v50, 0.0  ;;  %vm373_vm3 = vcmp.lt.s32.totalorder %v1553_v22, %v372_v31 }
 0x18d   :  { %v1673_v55 = vpop.eup %1185  ;;  %v665_v57 = vsel %vm553_vm15, %v1669_v52, 0.0  ;;  %vm374_vm4 = vmand %vm370_vm1, %vm373_vm3 }
 0x18e   :  { %v664_v56 = vadd.f32 %v663_v54, %v662_v53  ;;  %v1677_v59 = vpop.eup %1187  ;;  %v667_v61 = vsel %vm553_vm15, %v1673_v55, 0.0 }
 0x18f   :  { %v500_v58 = vpop.f32.mrf.mxu3  ;;  %v1681_v62 = vpop.eup %1189  ;;  %v669_v0 = vsel %vm553_vm15, %v1677_v59, 0.0 }
 0x190   :  { %v666_v60 = vadd.f32 %v665_v57, %v664_v56  ;;  %v1685_v1 = vpop.eup %1191  ;;  %v671_v4 = vsel %vm553_vm15, %v1681_v62, 0.0  ;;  %v524_v19 = vmul.f32 0.35355338, %v500_v58  ;;  %v1304_v56 = vmov 0.0  }
 0x191   :  { %v673_v5 = vsel %vm553_vm15, %v1685_v1, 0.0  ;;  %v1107_v57 = vsel %vm374_vm4, 1.0, %v1304_v56 }
 0x192   :  { %v668_v63 = vadd.f32 %v667_v61, %v666_v60  ;;  %v581_v28 = vsel %vm553_vm15, %v524_v19, -inf  ;;  %1161 = vmatpush.msk.msrb.mxu2 %vm782_vm5, %v1107_v57  ;;  %1133 = vmatpush.msk.msra.mxu1 %vm782_vm5, %v1107_v57 }
 0x193   :  { %v582_v40 = vmax.f32 %v578_v8, %v581_v28 }
 0x194   :  { %v670_v2 = vadd.f32 %v669_v0, %v668_v63  ;;  %1150 = vmatpush.msk.msrb.mxu1 %vm782_vm5, %v1107_v57 }
 0x196   :  { %v672_v6 = vadd.f32 %v671_v4, %v670_v2 }
 0x197   :  { %v503_v7 = vpop.f32.mrf.mxu3 }
 0x198   :  { %v674_v9 = vadd.f32 %v673_v5, %v672_v6  ;;  %v1692_v21 = vmul.f32 0.35355338, %v503_v7 }
 0x19a   :  { %v583_v36 = vsel %vm553_vm15, %v1692_v21, -inf  ;;  %v675_v51 = vrot.slane %v674_v9, 4 }
 0x19b   :  { %v584_v42 = vmax.f32 %v580_v32, %v583_v36 }
 0x19c   :  { %v676_v34 = vadd.f32 %v675_v51, %v674_v9 }
 0x19e   :  { %v677_v23 = vrot.slane %v676_v34, 2 }
 0x19f   :  { %v506_v10 = vpop.f32.mrf.mxu3 }
 0x1a0   :  { %v1696_v25 = vmul.f32 0.35355338, %v506_v10 }
 0x1a2   :  { %v585_v29 = vsel %vm553_vm15, %v1696_v25, -inf }
 0x1a3   :  { %v586_v11 = vmax.f32 %v582_v40, %v585_v29 }
 0x1a7   :  { %v509_v39 = vpop.f32.mrf.mxu3 }
 0x1a8   :  { %v527_v30 = vmul.f32 0.35355338, %v509_v39 }
 0x1aa   :  { %v587_v3 = vsel %vm553_vm15, %v527_v30, -inf }
 0x1ab   :  { %v588_v43 = vmax.f32 %v584_v42, %v587_v3 }
 0x1ad   :  { %v589_v33 = vmax.f32 %v586_v11, %v588_v43 }
 0x1af   :  { %v590_v45 = vrot.slane %v589_v33, 4 }
 0x1b1   :  { %v591_v47 = vmax.f32 %v589_v33, %v590_v45 }
 0x1b3   :  { %v592_v12 = vrot.slane %v591_v47, 2 }
 0x1b5   :  { %v593_v41 = vmax.f32 %v591_v47, %v592_v12 }
 0x1b7   :  { %v594_v16 = vrot.slane %v593_v41, 1 }
 0x1b9   :  { %v595_v44 = vmax.f32 %v593_v41, %v594_v16 }
 0x1bb   :  { %v601_v49 = vmax.f32 %v595_v44, %v597_v38 }
 0x1bd   :  { %v603_v53 = vperm.slane %v601_v49, 0  ;;  %v654_v54 = vrot.slane %v601_v49, 7 }
 0x1bf   :  { %v612_v58 = vsub.f32 %v520_v15, %v603_v53  ;;  %v613_v60 = vsub.f32 %v521_v18, %v603_v53  ;;  %v614_v61 = vsub.f32 %v522_v13, %v603_v53  ;;  %v615_v63 = vsub.f32 %v523_v14, %v603_v53 }
 0x1c0   :  { %v616_v0 = vsub.f32 %v524_v19, %v603_v53  ;;  %v655_v22 = vsel %vm287_vm2, %v654_v54, %v1656_v37  ;;  %v617_v5 = vsub.f32 %v1692_v21, %v603_v53  ;;  %v618_v15 = vsub.f32 %v1696_v25, %v603_v53 }
 0x1c1   :  { %v636_v2 = vmul.f32 1.442695, %v612_v58  ;;  %v638_v4 = vmul.f32 1.442695, %v613_v60  ;;  %v640_v6 = vmul.f32 1.442695, %v614_v61  ;;  %v657_v10 = vsub.f32 %v1653_v35, %v655_v22 }
 0x1c2   :  { %v642_v7 = vmul.f32 1.442695, %v615_v63  ;;  %v644_v13 = vmul.f32 1.442695, %v616_v0  ;;  %v619_v9 = vsub.f32 %v527_v30, %v603_v53  ;;  %v646_v14 = vmul.f32 1.442695, %v617_v5 }
 0x1c3   :  { %1193 = vpow2.f32 %v636_v2  ;;  %v658_v18 = vmul.f32 1.442695, %v657_v10  ;;  %v678_v19 = vadd.f32 %v677_v23, %v676_v34  ;;  %v648_v24 = vmul.f32 1.442695, %v618_v15 }
 0x1c4   :  { %1195 = vpow2.f32 %v638_v4  ;;  %v650_v26 = vmul.f32 1.442695, %v619_v9  ;;  %v876_v9 = vpop.permute.xlu0 %875 }
 0x1c5   :  { %1197 = vpow2.f32 %v640_v6  ;;  %v679_v36 = vrot.slane %v678_v19, 1 }
 0x1c6   :  { %1199 = vpow2.f32 %v642_v7 }
 0x1c7   :  { %1201 = vpow2.f32 %v644_v13  ;;  %v680_v42 = vadd.f32 %v679_v36, %v678_v19 }
 0x1c8   :  { %1203 = vpow2.f32 %v646_v14  ;;  %v868_v14 = vpop.permute.xlu1 %867 }
 0x1c9   :  { %v1716_v37 = vpop.eup %1193  ;;  %1205 = vpow2.f32 %v658_v18 }
 0x1ca   :  { %v1196_v21 = vpop.eup %1195  ;;  %v681_v35 = vsel %vm553_vm15, %v1716_v37, 0.0  ;;  %1207 = vpow2.f32 %v648_v24 }
 0x1cb   :  { %v1198_v27 = vpop.eup %1197  ;;  %v682_v25 = vsel %vm553_vm15, %v1196_v21, 0.0  ;;  %1209 = vpow2.f32 %v650_v26 }
 0x1cc   :  { %v1200_v28 = vpop.eup %1199  ;;  %v683_v8 = vadd.f32 %v682_v25, %v681_v35  ;;  %v684_v32 = vsel %vm553_vm15, %v1198_v27, 0.0  ;;  %v884_v18 = vpop.permute.xlu0 %883 }
 0x1cd   :  { %v1202_v39 = vpop.eup %1201  ;;  %v686_v30 = vsel %vm553_vm15, %v1200_v28, 0.0 }
 0x1ce   :  { %v685_v29 = vadd.f32 %v684_v32, %v683_v8  ;;  %v1204_v40 = vpop.eup %1203  ;;  %v688_v43 = vsel %vm553_vm15, %v1202_v39, 0.0 }
 0x1cf   :  { %v1206_v11 = vpop.eup %1205  ;;  %v690_v12 = vsel %vm553_vm15, %v1204_v40, 0.0 }
 0x1d0   :  { %v687_v3 = vadd.f32 %v686_v30, %v685_v29  ;;  %v1208_v33 = vpop.eup %1207  ;;  %v706_v47 = vadd.f32 %v1206_v11, %v680_v42  ;;  %v703_v4 = vrot.slane %v1206_v11, 1  ;;  %v870_v24 = vpop.permute.xlu1 %869 }
 0x1d1   :  { %v1210_v41 = vpop.eup %1209  ;;  %v692_v17 = vsel %vm553_vm15, %v1208_v33, 0.0 }
 0x1d2   :  { %v689_v45 = vadd.f32 %v688_v43, %v687_v3  ;;  %1211 = vrcp.f32 %v706_v47  ;;  %v694_v44 = vsel %vm553_vm15, %v1210_v41, 0.0 }
 0x1d4   :  { %v691_v16 = vadd.f32 %v690_v12, %v689_v45 }
 0x1d6   :  { %v693_v38 = vadd.f32 %v692_v17, %v691_v16 }
 0x1d8   :  { %v695_v46 = vadd.f32 %v694_v44, %v693_v38  ;;  %v1212_v31 = vpop.eup %1211 }
 0x1d9   :  { %v710_v51 = vperm.slane %v1212_v31, 0 }
 0x1da   :  { %v696_v49 = vrot.slane %v695_v46, 4 }
 0x1db   :  { %v712_v54 = vmul.f32 %v1659_v20, %v710_v51  ;;  %v715_v56 = vmul.f32 %v1669_v52, %v710_v51  ;;  %v713_v57 = vmul.f32 %v1661_v48, %v710_v51  ;;  %v716_v58 = vmul.f32 %v1673_v55, %v710_v51 }
 0x1dc   :  { %v697_v53 = vadd.f32 %v696_v49, %v695_v46  ;;  %v714_v61 = vmul.f32 %v1665_v50, %v710_v51  ;;  %v717_v63 = vmul.f32 %v1677_v59, %v710_v51  ;;  %v718_v34 = vmul.f32 %v1681_v62, %v710_v51 }
 0x1dd   :  { %1134 = vmatmul.msk.f32.vlgmr.msra.gmra.mxu1 %vm553_vm15, %v712_v54  ;;  %1137 = vmatmul.msk.f32.vlgmr.msrb.gmra.mxu2 %vm553_vm15, %v715_v56  ;;  %v719_v0 = vmul.f32 %v1685_v1, %v710_v51 }
 0x1de   :  { %v698_v60 = vrot.slane %v697_v53, 2 }
 0x1e0   :  { %v699_v20 = vadd.f32 %v698_v60, %v697_v53 }
 0x1e2   :  { %v700_v2 = vrot.slane %v699_v20, 1 }
 0x1e4   :  { %v701_v52 = vadd.f32 %v700_v2, %v699_v20 }
 0x1e5   :  { %1135 = vmatmul.msk.f32.gmra.mxu1 %vm553_vm15, %v713_v57  ;;  %1138 = vmatmul.msk.f32.gmra.mxu2 %vm553_vm15, %v716_v58 }
 0x1e6   :  { %v707_v48 = vadd.f32 %v703_v4, %v701_v52 }
 0x1e8   :  { %1213 = vrcp.f32 %v707_v48 }
 0x1ed   :  { %1136 = vmatmul.msk.f32.gmra.mxu1 %vm553_vm15, %v714_v61  ;;  %1139 = vmatmul.msk.f32.gmra.mxu2 %vm553_vm15, %v717_v63 }
 0x1ee   :  { %v1214_v50 = vpop.eup %1213 }
 0x1ef   :  { %v711_v55 = vperm.slane %v1214_v50, 0  ;;  %v730_v59 = vrot.slane %v1214_v50, 7  ;;  %v1010_v50 = vld [vmem:[%s1800_s7 + $0x18] sm:$0xff] }
 0x1f0   :  { %1033 = vmatpush.msra.mxu1 %v1010_v50 }
 0x1f1   :  { %v731_v62 = vsel %vm287_vm2, %v730_v59, %v1212_v31  ;;  %v721_v1 = vmul.f32 %v1196_v21, %v711_v55  ;;  %v722_v6 = vmul.f32 %v1198_v27, %v711_v55  ;;  %v723_v5 = vmul.f32 %v1200_v28, %v711_v55  ;;  %v886_v21 = vpop.permute.xlu0 %885  ;;  %v874_v27 = vpop.permute.xlu1 %873 }
 0x1f2   :  { %v733_v22 = vmul.f32 %v1206_v11, %v731_v62  ;;  %v724_v7 = vmul.f32 %v1202_v39, %v711_v55  ;;  %v725_v10 = vmul.f32 %v1204_v40, %v711_v55  ;;  %v726_v23 = vmul.f32 %v1208_v33, %v711_v55  ;;  %v872_v28 = vpop.permute.xlu2 %871  ;;  %v1008_v62 = vld [vmem:[%s1800_s7 + $0x8] sm:$0xff] }
 0x1f3   :  { %v727_v15 = vmul.f32 %v1210_v41, %v711_v55  ;;  %v720_v13 = vmul.f32 %v1716_v37, %v711_v55  ;;  %v1009_v55 = vld [vmem:[%s1800_s7 + $0x10] sm:$0xff] }
 0x1f4   :  { %1034 = vmatpush.msra.mxu1 %v1009_v55 }
 0x1f5   :  { %1140 = vmatmul.msk.f32.gmra.mxu2 %vm553_vm15, %v718_v34  ;;  %1151 = vmatmul.msk.f32.vlgmr.msrb.gmra.mxu1 %vm553_vm15, %v733_v22  ;;  %v1007_v22 = vld [vmem:[%s1800_s7] sm:$0xff] }
 0x1f6   :  { %1035 = vmatpush.msra.mxu1 %v1008_v62 }
 0x1f8   :  { %1036 = vmatpush.msra.mxu1 %v1007_v22 }
 0x1f9   :  { %v890_v40 = vpop.permute.xlu0 %889  ;;  %v894_v43 = vpop.permute.xlu1 %893 }
 0x1fa   :  { %v878_v47 = vpop.permute.xlu2 %877 }
 0x1fd   :  { %1141 = vmatmul.msk.f32.gmra.mxu2 %vm553_vm15, %v719_v0 }
 0x201   :  { %v896_v31 = vpop.permute.xlu0 %895  ;;  %v880_v49 = vpop.permute.xlu1 %879 }
 0x202   :  { %v888_v4 = vpop.permute.xlu2 %887 }
 0x205   :  { %1142 = vmatmul.msk.f32.gmra.mxu2 %vm553_vm15, %v720_v13 }
 0x209   :  { %v882_v57 = vpop.permute.xlu0 %881 }
 0x20d   :  { %1143 = vmatmul.msk.f32.gmra.mxu2 %vm553_vm15, %v721_v1 }
 0x215   :  { %1144 = vmatmul.msk.f32.gmra.mxu2 %vm553_vm15, %v722_v6 }
 0x21d   :  { %1145 = vmatmul.msk.f32.gmra.mxu2 %vm553_vm15, %v723_v5 }
 0x225   :  { %1146 = vmatmul.msk.f32.gmra.mxu2 %vm553_vm15, %v724_v7 }
 0x22d   :  { %1147 = vmatmul.msk.f32.gmra.mxu2 %vm553_vm15, %v725_v10  ;;  %v892_v10 = vpop.permute.xlu2 %891 }
 0x235   :  { %1148 = vmatmul.msk.f32.gmra.mxu2 %vm553_vm15, %v726_v23 }
 0x23d   :  { %1149 = vmatmul.msk.f32.gmra.mxu2 %vm553_vm15, %v727_v15 }
 0x25a   :  { %v803_v19 = vpop.f32.mrf.mxu1 }
 0x25b   :  { %v915_v25 = vmul.f32 %v868_v14, %v803_v19 }
 0x25d   :  { %v931_v39 = vsel %vm105_vm0, %v915_v25, 0.0 }
 0x260   :  { %v812_v37 = vpop.f32.mrf.mxu2 }
 0x261   :  { %v918_v29 = vmul.f32 %v874_v27, %v812_v37 }
 0x262   :  { %v806_v26 = vpop.f32.mrf.mxu1 }
 0x263   :  { %v916_v35 = vmul.f32 %v870_v24, %v806_v26  ;;  %v936_v45 = vsel %vm105_vm0, %v918_v29, 0.0 }
 0x265   :  { %v932_v8 = vsel %vm105_vm0, %v916_v35, 0.0 }
 0x266   :  { %v933_v42 = vadd.f32 %v932_v8, %v931_v39 }
 0x268   :  { %v815_v36 = vpop.f32.mrf.mxu2 }
 0x269   :  { %v919_v3 = vmul.f32 %v876_v9, %v815_v36  ;;  %v898_v36 = vpop.permute.xlu2 %897 }
 0x26a   :  { %v809_v32 = vpop.f32.mrf.mxu1 }
 0x26b   :  { %v917_v30 = vmul.f32 %v872_v28, %v809_v32  ;;  %v938_v16 = vsel %vm105_vm0, %v919_v3, 0.0 }
 0x26d   :  { %v934_v11 = vsel %vm105_vm0, %v917_v30, 0.0 }
 0x26e   :  { %v935_v33 = vadd.f32 %v934_v11, %v933_v42 }
 0x270   :  { %v937_v12 = vadd.f32 %v936_v45, %v935_v33  ;;  %v818_v41 = vpop.f32.mrf.mxu2 }
 0x271   :  { %v920_v17 = vmul.f32 %v878_v47, %v818_v41 }
 0x272   :  { %v939_v38 = vadd.f32 %v938_v16, %v937_v12  ;;  %v993_v45 = vpop.f32.mrf.mxu1  ;;  %v998_v12 = vpop.permute.xlu1 %997 }
 0x273   :  { %v940_v44 = vsel %vm105_vm0, %v920_v17, 0.0  ;;  %v1000_v41 = vmul.f32 %v998_v12, %v993_v45 }
 0x274   :  { %v941_v46 = vadd.f32 %v940_v44, %v939_v38 }
 0x275   :  { %v1002_v44 = vrot.slane %v1000_v41, 1 }
 0x278   :  { %v821_v51 = vpop.f32.mrf.mxu2 }
 0x279   :  { %v921_v53 = vmul.f32 %v880_v49, %v821_v51 }
 0x27b   :  { %v942_v54 = vsel %vm105_vm0, %v921_v53, 0.0 }
 0x27c   :  { %v943_v56 = vadd.f32 %v942_v54, %v941_v46 }
 0x280   :  { %v824_v58 = vpop.f32.mrf.mxu2 }
 0x281   :  { %v922_v60 = vmul.f32 %v882_v57, %v824_v58 }
 0x283   :  { %v944_v61 = vsel %vm105_vm0, %v922_v60, 0.0 }
 0x284   :  { %v945_v63 = vadd.f32 %v944_v61, %v943_v56  ;;  %v1174_v56 = vld [vmem:[%s1801_s8] ss:$0 sm:$0xff]  ;;  %s1305_s8 = smov [#allocation7]  }
 0x285   :  { %s1072_s11 = sshll.u32 %s1305_s8, 4  ;;  %s1073_s11 = int_to_ptr.vmem [resolvable:$true] %s1072_s11 }
 0x286   :  { %v946_v26 = vrot.slane %v945_v63, 4 }
 0x288   :  { %v827_v34 = vpop.f32.mrf.mxu2  ;;  %v947_v8 = vadd.f32 %v946_v26, %v945_v63 }
 0x289   :  { %v923_v1 = vmul.f32 %v884_v18, %v827_v34 }
 0x28a   :  { %v948_v42 = vrot.slane %v947_v8, 2 }
 0x28b   :  { %v952_v23 = vsel %vm105_vm0, %v923_v1, 0.0 }
 0x290   :  { %v830_v0 = vpop.f32.mrf.mxu2 }
 0x291   :  { %v924_v59 = vmul.f32 %v886_v21, %v830_v0 }
 0x293   :  { %v953_v5 = vsel %vm105_vm0, %v924_v59, 0.0 }
 0x294   :  { %v954_v9 = vadd.f32 %v953_v5, %v952_v23 }
 0x298   :  { %v833_v20 = vpop.f32.mrf.mxu2 }
 0x299   :  { %v925_v6 = vmul.f32 %v888_v4, %v833_v20 }
 0x29b   :  { %v955_v15 = vsel %vm105_vm0, %v925_v6, 0.0 }
 0x29c   :  { %v956_v24 = vadd.f32 %v955_v15, %v954_v9 }
 0x2a0   :  { %v836_v2 = vpop.f32.mrf.mxu2 }
 0x2a1   :  { %v926_v7 = vmul.f32 %v890_v40, %v836_v2 }
 0x2a3   :  { %v957_v18 = vsel %vm105_vm0, %v926_v7, 0.0 }
 0x2a4   :  { %v958_v35 = vadd.f32 %v957_v18, %v956_v24 }
 0x2a8   :  { %v839_v52 = vpop.f32.mrf.mxu2 }
 0x2a9   :  { %v927_v13 = vmul.f32 %v892_v10, %v839_v52 }
 0x2ab   :  { %v959_v37 = vsel %vm105_vm0, %v927_v13, 0.0 }
 0x2ac   :  { %v960_v25 = vadd.f32 %v959_v37, %v958_v35 }
 0x2b0   :  { %v842_v48 = vpop.f32.mrf.mxu2 }
 0x2b1   :  { %v928_v19 = vmul.f32 %v894_v43, %v842_v48  ;;  %v949_v43 = vadd.f32 %v948_v42, %v947_v8 }
 0x2b3   :  { %v961_v27 = vsel %vm105_vm0, %v928_v19, 0.0  ;;  %v950_v16 = vrot.slane %v949_v43, 1 }
 0x2b4   :  { %v962_v32 = vadd.f32 %v961_v27, %v960_v25 }
 0x2b5   :  { %v951_v46 = vadd.f32 %v950_v16, %v949_v43 }
 0x2b7   :  { %v1005_v51 = vadd.f32 %v1000_v41, %v951_v46 }
 0x2b8   :  { %v845_v14 = vpop.f32.mrf.mxu2 }
 0x2b9   :  { %v929_v21 = vmul.f32 %v896_v31, %v845_v14 }
 0x2bb   :  { %v963_v28 = vsel %vm105_vm0, %v929_v21, 0.0 }
 0x2bc   :  { %v964_v30 = vadd.f32 %v963_v28, %v962_v32 }
 0x2c0   :  { %v848_v39 = vpop.f32.mrf.mxu2 }
 0x2c1   :  { %v930_v29 = vmul.f32 %v898_v36, %v848_v39 }
 0x2c3   :  { %v965_v40 = vsel %vm105_vm0, %v930_v29, 0.0 }
 0x2c4   :  { %v966_v3 = vadd.f32 %v965_v40, %v964_v30 }
 0x2c6   :  { %v967_v11 = vrot.slane %v966_v3, 4 }
 0x2c8   :  { %v968_v33 = vadd.f32 %v967_v11, %v966_v3 }
 0x2ca   :  { %v969_v47 = vrot.slane %v968_v33, 2 }
 0x2cc   :  { %v970_v17 = vadd.f32 %v969_v47, %v968_v33 }
 0x2ce   :  { %v971_v38 = vrot.slane %v970_v17, 1 }
 0x2d0   :  { %v972_v31 = vadd.f32 %v971_v38, %v970_v17 }
 0x2d2   :  { %v1006_v49 = vadd.f32 %v1002_v44, %v972_v31 }
 0x2d4   :  { %v1017_v53 = vrot.slane %v1006_v49, 7 }
 0x2d6   :  { %v1018_v54 = vsel %vm287_vm2, %v1017_v53, %v1005_v51 }
 0x2d7   :  { %1152 = vmatmul.msk.f32.vlgmr.msra.gmra.mxu1 %vm105_vm0, %v1018_v54 }
 0x354   :  { %v1038_v57 = vpop.f32.mrf.mxu1 }
 0x355   :  { %v1039_v58 = vadd.f32 %v1174_v56, %v1038_v57 }
 0x357   :  { %v1042_v60 = vsel %vm1041_vm6, %v1039_v58, -inf }
 0x358   :  { %1043 = vmax.xlane.f32.xlu2 %v1042_v60 }
 0x3cb   :  { %v1044_v61 = vpop.xlane.xlu2 %1043 }
 0x3cc   :  { %v1045_v63 = vsub.f32 %v1039_v58, %v1044_v61 }
 0x3ce   :  { %v1046_v34 = vmul.f32 1.442695, %v1045_v63 }
 0x3d0   :  { %1215 = vpow2.f32 %v1046_v34 }
 0x3d6   :  { %v1216_v0 = vpop.eup %1215 }
 0x3d7   :  { %v1048_v20 = vsel %vm1041_vm6, %v1216_v0, 0.0 }
 0x3d8   :  { %1049 = vadd.xlane.f32.xlu0 %v1048_v20 }
 0x44b   :  { %v1050_v2 = vpop.xlane.xlu0 %1049 }
 0x44c   :  { %1217 = vrcp.f32 %v1050_v2  ;;  %v1062_v50 = vand.u32 2147483648, %v1050_v2  ;;  %v1060_v59 = vand.u32 2147483647, %v1050_v2  ;;  %vm1056_vm2 = vweird.f32 %v1050_v2 }
 0x44e   :  { %v1063_v1 = vor.u32 1.1754944e-38, %v1062_v50  ;;  %vm1061_vm8 = vcmp.eq.f32.partialorder %v1060_v59, 8.507059e+37 }
 0x452   :  { %v1218_v52 = vpop.eup %1217 }
 0x453   :  { %v1052_v4 = vmul.f32 %v1218_v52, %v1050_v2  ;;  %vm1057_vm0 = vweird.f32 %v1218_v52 }
 0x454   :  { %vm1058_vm7 = vmor %vm1056_vm2, %vm1057_vm0 }
 0x455   :  { %v1053_v48 = vsub.f32 1.0, %v1052_v4 }
 0x457   :  { %v1054_v55 = vmul.f32 %v1218_v52, %v1053_v48 }
 0x459   :  { %v1055_v62 = vadd.f32 %v1218_v52, %v1054_v55 }
 0x45b   :  { %v1059_v6 = vsel %vm1058_vm7, %v1218_v52, %v1055_v62 }
 0x45c   :  { %v1064_v22 = vsel %vm1061_vm8, %v1063_v1, %v1059_v6 }
 0x45d   :  { %v1065_v5 = vmul.f32 %v1216_v0, %v1064_v22 }
 0x45f   :  { %1066 = vst.msk [vmem:[#allocation7] sm:$0x3] %vm1041_vm6, %v1065_v5 }
 0x460   :  { %1077 = dma.vmem_to_hbm [thread:$0]  %s1073_s11, 32, %s1075_s14, [#allocation4]  }
 0x461   :  { %1295 = dma.done.wait [#allocation4], 32  }
 0x462   :  { %1296 = vsyncadd [#allocation4], 4294967264 }
 0x463   :  { %1082 = vsyncpa [#allocation3], 1 }
 0x464   :  { %1083 = vsyncpa [#allocation6], 1 }
 0x465   :  { %1084 = vsyncpa [#allocation4], 1 }

</bundles_post_ra>
